<compile_context>
chip_gen: v7x
topology: tpu7x:2x2x1
jax: 0.10.0
libtpu: 0.0.40
codegen_flags: <defaults>
</compile_context>

<pallas_src>
import jax
import jax.numpy as jnp
import numpy as np
from jax.experimental import pallas as pl
from jax.experimental.pallas import tpu as pltpu


def _vmem_limit_bytes():
    """Explicit scoped-VMEM limit derived from the chip's physical VMEM."""
    try:
        cap = pltpu.get_tpu_info().vmem_capacity_bytes
    except Exception:
        cap = 64 << 20                 # v7x physical VMEM — safe on every gen
    return min(int(cap * 0.75), 100 << 20)


# --------------------- fused path: whole image fits in VMEM -------------------

def _se_fused_kernel(x_ref, w1_ref, b1_ref, w2_ref, b2_ref, o_ref):
    # x block: (nb, C, HW) — C on sublanes, HW lane-dense.  Upcast to f32.
    x = x_ref[...].astype(jnp.float32)
    # AdaptiveAvgPool2d(1): mean over the spatial (lane) axis -> (nb, C).
    pooled = jnp.mean(x, axis=-1)
    # Conv2d(C -> R, 1x1) == matmul with (C, R) weight + bias.
    h = jnp.dot(pooled, w1_ref[...],
                preferred_element_type=jnp.float32) + b1_ref[...]      # (nb, R)
    # Swish: h * sigmoid(h)   (sigmoid on the EUP slot)
    h = h * jax.nn.sigmoid(h)
    # Conv2d(R -> C, 1x1)
    s = jnp.dot(h, w2_ref[...],
                preferred_element_type=jnp.float32) + b2_ref[...]      # (nb, C)
    s = jax.nn.sigmoid(s)
    # Broadcast the per-(image, channel) scale over every spatial position.
    o_ref[...] = (x * s[:, :, None]).astype(o_ref.dtype)


# ----------------- two-pass path: one image exceeds the slab budget -----------

def _make_pool_kernel(hw, hw_tile):
    def pool_kernel(x_ref, sum_ref):
        # x block: (1, C, hw_tile); sum block: (1, C, 1), resident across hw.
        h_i = pl.program_id(1)

        @pl.when(h_i == 0)
        def _():
            sum_ref[...] = jnp.zeros_like(sum_ref)

        x = x_ref[...].astype(jnp.float32)
        # Mask the padded tail of the last HW tile (if hw_tile does not
        # divide HW) so it does not pollute the pooled sum.
        lane = jax.lax.broadcasted_iota(jnp.int32, x.shape, 2) + h_i * hw_tile
        x = jnp.where(lane < hw, x, 0.0)
        sum_ref[...] += jnp.sum(x, axis=-1, keepdims=True)
    return pool_kernel


def _scale_kernel(x_ref, s_ref, o_ref):
    # x block: (1, C, hw_tile); s block: (1, C, 1) broadcasts over lanes.
    x = x_ref[...].astype(jnp.float32)
    o_ref[...] = (x * s_ref[...]).astype(o_ref.dtype)


# ------------------------------------ wrapper ---------------------------------

def squeeze_excitation(x_nchw, w1, b1, w2, b2, *, slab_budget_bytes=None):
    """x_nchw: (N, C, H, W), f32 or bf16.  w1: (R, C) conv1 weight, b1: (R,),
    w2: (C, R) conv2 weight, b2: (C,).  Returns (N, C, H, W), same dtype as x."""
    N, C, H, W = x_nchw.shape
    R = w1.shape[0]
    HW = H * W
    itemsize = jnp.dtype(x_nchw.dtype).itemsize
    out_dtype = x_nchw.dtype

    vmem_limit = _vmem_limit_bytes()
    if slab_budget_bytes is None:
        # BlockSpec double-buffers both the x input and the y output, so the
        # resident footprint is ~4x one slab (+ tiny weights).
        slab_budget_bytes = min(vmem_limit // 4, 8 << 20)

    # Free view: NCHW -> (N, C, HW).  No transpose, no data movement.
    x = x_nchw.reshape(N, C, HW)
    w1_t = jnp.transpose(w1).astype(jnp.float32)       # (C, R): pooled @ w1_t
    w2_t = jnp.transpose(w2).astype(jnp.float32)       # (R, C)
    b1_row = b1.reshape(1, R).astype(jnp.float32)
    b2_row = b2.reshape(1, C).astype(jnp.float32)

    img_bytes = C * HW * itemsize

    if img_bytes <= slab_budget_bytes:
        # ---------------- fused single-pass path ----------------
        nb_cap = max(1, slab_budget_bytes // img_bytes)
        # Keep >= min(N, 8) grid steps: interior steps get full DMA/compute
        # overlap, and on v7x the "parallel" batch axis feeds both TensorCores.
        target_steps = min(N, 8)
        nb = int(max(1, min(nb_cap, pl.cdiv(N, target_steps))))
        grid = (pl.cdiv(N, nb),)

        cost = pl.CostEstimate(
            flops=int(2 * N * C * HW + 4 * N * C * R),
            transcendentals=int(N * (R + C)),
            bytes_accessed=int(2 * N * C * HW * itemsize),
        )

        out = pl.pallas_call(
            _se_fused_kernel,
            out_shape=jax.ShapeDtypeStruct((N, C, HW), out_dtype),
            grid_spec=pltpu.PrefetchScalarGridSpec(
                num_scalar_prefetch=0,
                grid=grid,
                in_specs=[
                    pl.BlockSpec((nb, C, HW), lambda n: (n, 0, 0)),
                    pl.BlockSpec((C, R), lambda n: (0, 0)),
                    pl.BlockSpec((1, R), lambda n: (0, 0)),
                    pl.BlockSpec((R, C), lambda n: (0, 0)),
                    pl.BlockSpec((1, C), lambda n: (0, 0)),
                ],
                out_specs=pl.BlockSpec((nb, C, HW), lambda n: (n, 0, 0)),
            ),
            compiler_params=pltpu.CompilerParams(
                dimension_semantics=("parallel",),
                vmem_limit_bytes=vmem_limit),
            cost_estimate=cost,
        )(x, w1_t, b1_row, w2_t, b2_row)
        return out.reshape(N, C, H, W)

    # ---------------- two-pass tiled path (large images) ----------------
    # Lane-dense HW tile: multiple of 128 that fits the budget (or full HW).
    hw_tile = max(128, (slab_budget_bytes // (C * itemsize)) // 128 * 128)
    hw_tile = min(hw_tile, HW)
    n_hw = int(pl.cdiv(HW, hw_tile))

    # Pass 1: pooled channel sums, HW axis innermost ("arbitrary"), resident
    # (1, C, 1) output block as the accumulator.
    pool_cost = pl.CostEstimate(
        flops=int(N * C * HW),
        transcendentals=0,
        bytes_accessed=int(N * C * HW * itemsize),
    )
    sums = pl.pallas_call(
        _make_pool_kernel(HW, hw_tile),
        out_shape=jax.ShapeDtypeStruct((N, C, 1), jnp.float32),
        grid_spec=pltpu.PrefetchScalarGridSpec(
            num_scalar_prefetch=0,
            grid=(N, n_hw),
            in_specs=[pl.BlockSpec((1, C, hw_tile), lambda n, h: (n, 0, h))],
            out_specs=pl.BlockSpec((1, C, 1), lambda n, h: (n, 0, 0)),
        ),
        compiler_params=pltpu.CompilerParams(
            dimension_semantics=("parallel", "arbitrary"),
            vmem_limit_bytes=vmem_limit),
        cost_estimate=pool_cost,
    )(x)

    # Tiny pooled MLP ((N,C)@(C,R)@(R,C) + sigmoids) — off the memory-bound
    # critical path; plain JAX between the two streaming passes.
    pooled = sums[:, :, 0] / HW                                   # (N, C) f32
    h = pooled @ w1_t + b1_row
    h = h * jax.nn.sigmoid(h)
    s = jax.nn.sigmoid(h @ w2_t + b2_row).astype(jnp.float32)     # (N, C)
    s = s.reshape(N, C, 1)

    # Pass 2: tiled broadcast-multiply (read x, write y once each).
    scale_cost = pl.CostEstimate(
        flops=int(N * C * HW),
        transcendentals=0,
        bytes_accessed=int(2 * N * C * HW * itemsize),
    )
    out = pl.pallas_call(
        _scale_kernel,
        out_shape=jax.ShapeDtypeStruct((N, C, HW), out_dtype),
        grid_spec=pltpu.PrefetchScalarGridSpec(
            num_scalar_prefetch=0,
            grid=(N, n_hw),
            in_specs=[
                pl.BlockSpec((1, C, hw_tile), lambda n, h: (n, 0, h)),
                pl.BlockSpec((1, C, 1), lambda n, h: (n, 0, 0)),
            ],
            out_specs=pl.BlockSpec((1, C, hw_tile), lambda n, h: (n, 0, h)),
        ),
        compiler_params=pltpu.CompilerParams(
            dimension_semantics=("parallel", "parallel"),
            vmem_limit_bytes=vmem_limit),
        cost_estimate=scale_cost,
    )(x, s)
    return out.reshape(N, C, H, W)


def _reference(x, w1, b1, w2, b2):
    # Pure-JAX reference of the PyTorch forward (NCHW, f32).
    x = x.astype(jnp.float32)
    pooled = jnp.mean(x, axis=(2, 3))                       # (N, C)
    h = pooled @ w1.T + b1                                  # (N, R)
    h = h * jax.nn.sigmoid(h)
    s = jax.nn.sigmoid(h @ w2.T + b2)                       # (N, C)
    return x * s[:, :, None, None]


if __name__ == "__main__":
    N, C, H, W = 2, 8, 16, 16
    R = 4                                                   # reduced_dim

    key = jax.random.PRNGKey(0)
    kx, k1, k2, k3, k4 = jax.random.split(key, 5)

    x = jax.random.normal(kx, (N, C, H, W), dtype=jnp.float32)
    # Conv2d(C, R, 1): weight (R, C, 1, 1) -> (R, C), bias (R,)
    w1 = jax.random.normal(k1, (R, C), dtype=jnp.float32) * 0.3
    b1 = jax.random.normal(k2, (R,), dtype=jnp.float32) * 0.1
    # Conv2d(R, C, 1): weight (C, R, 1, 1) -> (C, R), bias (C,)
    w2 = jax.random.normal(k3, (C, R), dtype=jnp.float32) * 0.3
    b2 = jax.random.normal(k4, (C,), dtype=jnp.float32) * 0.1

    y_ref = _reference(x, w1, b1, w2, b2)

    # 1) Fused path, f32.
    y = jax.block_until_ready(squeeze_excitation(x, w1, b1, w2, b2))
    np.testing.assert_allclose(np.asarray(y), np.asarray(y_ref),
                               rtol=1e-5, atol=1e-5)

    # 2) Fused path, bf16 I/O (kernel upcasts internally).
    y_bf = jax.block_until_ready(
        squeeze_excitation(x.astype(jnp.bfloat16), w1, b1, w2, b2))
    assert y_bf.dtype == jnp.bfloat16
    np.testing.assert_allclose(np.asarray(y_bf, dtype=np.float32),
                               np.asarray(y_ref), rtol=4e-2, atol=4e-2)

    # 3) Two-pass tiled path (force it with a tiny slab budget).
    y_tp = jax.block_until_ready(
        squeeze_excitation(x, w1, b1, w2, b2, slab_budget_bytes=2048))
    np.testing.assert_allclose(np.asarray(y_tp), np.asarray(y_ref),
                               rtol=1e-5, atol=1e-5)

    print("KERNEL_OK")
</pallas_src>

<mosaic_0001>
module attributes {stable_mosaic.version = 11 : i64} {
  func.func @_se_fused_kernel(%arg0: i32, %arg1: memref<1x8x256xf32, #tpu.memory_space<vmem>>, %arg2: memref<8x4xf32, #tpu.memory_space<vmem>>, %arg3: memref<1x4xf32, #tpu.memory_space<vmem>>, %arg4: memref<4x8xf32, #tpu.memory_space<vmem>>, %arg5: memref<1x8xf32, #tpu.memory_space<vmem>>, %arg6: memref<1x8x256xf32, #tpu.memory_space<vmem>>) attributes {dimension_semantics = [#tpu.dimension_semantics<parallel>], iteration_bounds = array<i64: 2>, scalar_prefetch = 0 : i64, scratch_operands = 0 : i64, tpu.core_type = #tpu.core_type<tc>, window_params = [{transform_indices = @transform_0, window_bounds = array<i64: 1, 8, 256>}, {pipeline_mode = #tpu.pipeline_mode<synchronous>, transform_indices = @transform_1, window_bounds = array<i64: 8, 4>}, {pipeline_mode = #tpu.pipeline_mode<synchronous>, transform_indices = @transform_2, window_bounds = array<i64: 1, 4>}, {pipeline_mode = #tpu.pipeline_mode<synchronous>, transform_indices = @transform_3, window_bounds = array<i64: 4, 8>}, {pipeline_mode = #tpu.pipeline_mode<synchronous>, transform_indices = @transform_4, window_bounds = array<i64: 1, 8>}, {transform_indices = @transform_5, window_bounds = array<i64: 1, 8, 256>}]} {
    %c0 = arith.constant 0 : index
    %c0_0 = arith.constant 0 : index
    %c0_1 = arith.constant 0 : index
    %0 = vector.load %arg1[%c0, %c0_0, %c0_1] : memref<1x8x256xf32, #tpu.memory_space<vmem>>, vector<1x8x256xf32>
    %cst = arith.constant dense<0.000000e+00> : vector<1x8xf32>
    %1 = vector.multi_reduction <add>, %0, %cst [2] : vector<1x8x256xf32> to vector<1x8xf32>
    %cst_2 = arith.constant 2.560000e+02 : f32
    %2 = vector.broadcast %cst_2 : f32 to vector<1x8xf32>
    %3 = arith.divf %1, %2 : vector<1x8xf32>
    %c0_3 = arith.constant 0 : index
    %c0_4 = arith.constant 0 : index
    %4 = vector.load %arg2[%c0_3, %c0_4] : memref<8x4xf32, #tpu.memory_space<vmem>>, vector<8x4xf32>
    %cst_5 = arith.constant dense<0.000000e+00> : vector<1x4xf32>
    %5 = tpu.matmul %3, %4, %cst_5 {dimension_numbers = #tpu.dot_dimension_numbers<[1], [0], [0], [1], [0, 0, 1, 1], [], []>} : vector<1x8xf32>, vector<8x4xf32>, vector<1x4xf32> -> vector<1x4xf32>
    %c0_6 = arith.constant 0 : index
    %c0_7 = arith.constant 0 : index
    %6 = vector.load %arg3[%c0_6, %c0_7] : memref<1x4xf32, #tpu.memory_space<vmem>>, vector<1x4xf32>
    %7 = arith.addf %5, %6 : vector<1x4xf32>
    %8 = arith.negf %7 : vector<1x4xf32>
    %9 = math.exp %8 : vector<1x4xf32>
    %cst_8 = arith.constant 1.000000e+00 : f32
    %10 = vector.broadcast %cst_8 : f32 to vector<1x4xf32>
    %11 = arith.addf %10, %9 : vector<1x4xf32>
    %12 = arith.divf %10, %11 : vector<1x4xf32>
    %13 = arith.mulf %7, %12 : vector<1x4xf32>
    %c0_9 = arith.constant 0 : index
    %c0_10 = arith.constant 0 : index
    %14 = vector.load %arg4[%c0_9, %c0_10] : memref<4x8xf32, #tpu.memory_space<vmem>>, vector<4x8xf32>
    %cst_11 = arith.constant dense<0.000000e+00> : vector<1x8xf32>
    %15 = tpu.matmul %13, %14, %cst_11 {dimension_numbers = #tpu.dot_dimension_numbers<[1], [0], [0], [1], [0, 0, 1, 1], [], []>} : vector<1x4xf32>, vector<4x8xf32>, vector<1x8xf32> -> vector<1x8xf32>
    %c0_12 = arith.constant 0 : index
    %c0_13 = arith.constant 0 : index
    %16 = vector.load %arg5[%c0_12, %c0_13] : memref<1x8xf32, #tpu.memory_space<vmem>>, vector<1x8xf32>
    %17 = arith.addf %15, %16 : vector<1x8xf32>
    %18 = arith.negf %17 : vector<1x8xf32>
    %19 = math.exp %18 : vector<1x8xf32>
    %cst_14 = arith.constant 1.000000e+00 : f32
    %20 = vector.broadcast %cst_14 : f32 to vector<1x8xf32>
    %21 = arith.addf %20, %19 : vector<1x8xf32>
    %22 = arith.divf %20, %21 : vector<1x8xf32>
    %23 = vector.shape_cast %22 : vector<1x8xf32> to vector<1x8x1xf32>
    %24 = vector.broadcast %23 : vector<1x8x1xf32> to vector<1x8x256xf32>
    %25 = arith.mulf %0, %24 : vector<1x8x256xf32>
    %c0_15 = arith.constant 0 : index
    %c0_16 = arith.constant 0 : index
    %c0_17 = arith.constant 0 : index
    %26 = vector.load %arg6[%c0_15, %c0_16, %c0_17] : memref<1x8x256xf32, #tpu.memory_space<vmem>>, vector<1x8x256xf32>
    tpu.vector_store %arg6[%c0_15, %c0_16, %c0_17], %25 {strides = array<i32>} : memref<1x8x256xf32, #tpu.memory_space<vmem>>, vector<1x8x256xf32>,
    return
  }
  func.func @transform_0(%arg0: i32) -> (i32, i32, i32) {
    %c0_i32 = arith.constant 0 : i32
    %c0_i32_0 = arith.constant 0 : i32
    %c0_i32_1 = arith.constant 0 : i32
    return %arg0, %c0_i32, %c0_i32_0 : i32, i32, i32
  }
  func.func @transform_1(%arg0: i32) -> (i32, i32) {
    %c0_i32 = arith.constant 0 : i32
    %c0_i32_0 = arith.constant 0 : i32
    %c0_i32_1 = arith.constant 0 : i32
    return %c0_i32, %c0_i32_0 : i32, i32
  }
  func.func @transform_2(%arg0: i32) -> (i32, i32) {
    %c0_i32 = arith.constant 0 : i32
    %c0_i32_0 = arith.constant 0 : i32
    %c0_i32_1 = arith.constant 0 : i32
    return %c0_i32, %c0_i32_0 : i32, i32
  }
  func.func @transform_3(%arg0: i32) -> (i32, i32) {
    %c0_i32 = arith.constant 0 : i32
    %c0_i32_0 = arith.constant 0 : i32
    %c0_i32_1 = arith.constant 0 : i32
    return %c0_i32, %c0_i32_0 : i32, i32
  }
  func.func @transform_4(%arg0: i32) -> (i32, i32) {
    %c0_i32 = arith.constant 0 : i32
    %c0_i32_0 = arith.constant 0 : i32
    %c0_i32_1 = arith.constant 0 : i32
    return %c0_i32, %c0_i32_0 : i32, i32
  }
  func.func @transform_5(%arg0: i32) -> (i32, i32, i32) {
    %c0_i32 = arith.constant 0 : i32
    %c0_i32_0 = arith.constant 0 : i32
    %c0_i32_1 = arith.constant 0 : i32
    return %arg0, %c0_i32, %c0_i32_0 : i32, i32, i32
  }
}

</mosaic_0001>

<bundles_post_ra>
// kernel: tpu_custom_call.1
= control target key start
LH: loop header
LB: loop body
LE: loop exit
PB: predicated region body
PF: predicated region fallthrough
CT: control target
= control target key end

     0   :  { %10 = vsyncpa [#allocation3], 0  ;;  %s919_s0 = inlined_call_operand.hbm [shape: f32[2,8,256], index: 0, kind: input, shape index: {}]   ;;  %s920_s1 = inlined_call_operand.vmem [shape: f32[8,4], index: 1, kind: input, shape index: {}]   ;;  %s921_s2 = inlined_call_operand.vmem [shape: f32[1,4], index: 2, kind: input, shape index: {}]   ;;  %s922_s3 = inlined_call_operand.vmem [shape: f32[4,8], index: 3, kind: input, shape index: {}]   ;;  %s923_s4 = inlined_call_operand.vmem [shape: f32[1,8], index: 4, kind: input, shape index: {}]   ;;  %s924_s5 = inlined_call_operand.hbm [shape: f32[2,8,256], index: 5, kind: output, shape index: {}]  }
   0x1   :  { %12 = vsyncpa [#allocation3 + $0x1], 0 }
   0x2   :  { %13 = vsyncpa [#allocation4], 0 }
   0x3   :  { %15 = vsyncpa [#allocation4 + $0x1], 0  ;;  %s742_s18 = smov 0   ;;  %s744_s19 = smov 0  }
   0x4   :  { %s746_s20 = smov 0   ;;  %s748_s21 = smov 0  }
   0x5 LB: > { %s763_s22 = sadd.s32 4294967295, %s706_s21   ;;  %s519_s23 = sadd.s32 4294967294, %s706_s21   ;;  %s706_s21 = sphi %s748_s21, %s939_s21   ;;  %s702_s20 = sphi %s746_s20, %s938_s20   ;;  %s698_s19 = sphi %s744_s19, %s937_s19   ;;  %s694_s18 = sphi %s742_s18, %s936_s18  }
   0x6   : > { %s767_s24 = sadd.s32 1, %s706_s21   ;;  %s28_s25 = sadd.s32 1, %s702_s20 }
   0x7   : > { %s25_s26 = ssub.s32 %s706_s21, %s767_s24  ;;  %p35_p0 = scmp.ne.s32.totalorder %s702_s20, %s698_s19 }
   0x8   : > { %p26_p1 = scmp.eq.s32.totalorder %s25_s26, 0  ;;  %p36_p2 = scmp.eq.s32.totalorder %s706_s21, 0 }
   0x9   : > { %p41_p3 = scmp.ne.s32.totalorder %s698_s19, %s694_s18  ;;  %p42_p4 = scmp.eq.s32.totalorder %s763_s22, 0 }
   0xa   : > { %s779_s27 = scalar_select %p26_p1, %s702_s20, %s28_s25  }
   0xb   : > { %p781_p5 = por %p36_p2, %p35_p0  ;;  %p785_p6 = por %p42_p4, %p41_p3 }
   0xc   : > { %p149_p7 = scmp.eq.s32.totalorder %s763_s22, 1  ;;  %p155_p8 = scmp.eq.s32.totalorder %s519_s23, 1 }
   0xd   : > { %p566_p10 = scmp.lt.s32.totalorder %s706_s21, 2  ;;  %s187_s7 = sand.u32 1, %s702_s20  }
   0xe   : > { %p792_p11 = por %p149_p7, %p35_p0  ;;  %p796_p12 = por %p155_p8, %p41_p3 }
   0xf   : > { %s538_s8 = sshll.u32 %s706_s21, 8  ;;  %s522_s9 = sshll.u32 %s187_s7, 4 }
  0x10   : > { %s928_s30 = scalar_select %p792_p11, 1, 0 }
  0x11   : > { %s929_s6 = scalar_select %p796_p12, 1, 0 }
  0x12   : > { %s805_s12 = scalar_lea.hbm %s919_s0, %s538_s8  ;;  %s191_s13 = scalar_lea.vmem [#allocation2], %s522_s9 }
  0x13   : > { %s199_s14 = sshll.u32 %s191_s13, 4  ;;  %p809_p13 = pnand %p566_p10, %p781_p5  ;;  %s813_s14 = int_to_ptr.vmem [resolvable:$true] %s199_s14 }
  0x14   : > { %s188_s16 = scalar_lea.sflag [#allocation3], %s187_s7  ;;  %s610_s17 = scalar_lea.hbm %s805_s12, 256 }
  0x15   : > { %p611_p2 = scmp.ne.s32.totalorder %s805_s12, %s610_s17  ;;  %p612_p3 = pneg %p809_p13 }
  0x16   : > { %s615_s26 = scalar_lea.hbm %s919_s0, 512  ;;  %p616_p5 = scmp.lt.u32.totalorder %s805_s12, %s919_s0 }
  0x17   : > { %p613_p4 = pnand %p612_p3, %p611_p2  ;;  %p617_p8 = scmp.lt.u32.totalorder %s615_s26, %s610_s17 }
  0x18   : > { %p619_p9 = scmp.lt.u32.totalorder %s610_s17, %s805_s12 }
  0x19   : > { %p614_p7 = pneg %p613_p4  ;;  %p618_p10 = por %p617_p8, %p616_p5 }
  0x1b   : > { %p620_p0 = por %p619_p9, %p618_p10 }
  0x1d   : > { %p621_p1 = pnand %p620_p0, %p614_p7 }
  0x1f   : > { %624 = shalt.err (!%p621_p1)
}
  0x20   : > { %s625_s7 = scalar_lea.vmem %s813_s14, 256  ;;  %s708_s9 = smov [#allocation2]  }
  0x21   : > { %p626_p2 = scmp.ne.s32.totalorder %s813_s14, %s625_s7  ;;  %s630_s10 = sshll.u32 %s708_s9, 4  ;;  %s631_s10 = int_to_ptr.vmem [resolvable:$false] %s630_s10 }
  0x22   : > { %s632_s11 = scalar_lea.vmem %s631_s10, 512  ;;  %p633_p11 = scmp.lt.s32.totalorder %s813_s14, %s631_s10 }
  0x23   : > { %p628_p4 = pnand %p626_p2, %p612_p3  ;;  %p634_p5 = scmp.lt.s32.totalorder %s632_s11, %s625_s7 }
  0x25   : > { %p629_p12 = pneg %p628_p4  ;;  %p635_p8 = por %p634_p5, %p633_p11 }
  0x27   : > { %p636_p9 = pnand %p635_p8, %p629_p12 }
  0x29   : > { %639 = shalt.err (!%p636_p9)
}
  0x2a   : > { %561 = dma.hbm_to_vmem [thread:$0]  (!%p809_p13), %s805_s12, 256, %s813_s14, %s188_s16  }
  0x2b   : > { %p931_p0 = scmp.lt.s32.totalorder %s706_s21, 3  ;;  %p932_p1 = scmp.ge.s32.totalorder %s706_s21, 1 }
  0x2d   : > { %p205_p3 = pnand %p932_p1, %p931_p0 }
  0x2e   : > { %s847_s13 = sand.u32 (!%p205_p3), 1, %s698_s19  }
  0x2f   : > { %208 = sbr.rel (%p205_p3) target bundleno = 819 (0x333), region = 40  ;;  %s526_s17 = sshll.u32 (!%p205_p3), %s847_s13, 4 }
  0x30   : > { %s211_s23 = scalar_lea.sflag (!%p205_p3), [#allocation3], %s847_s13  ;;  %s214_s15 = scalar_lea.vmem (!%p205_p3), [#allocation2], %s526_s17 }
  0x36   : > { %685 = dma.done.wait (%p785_p6), %s211_s23, 256  }
  0x37   : > { %687 = vsyncadd (%p785_p6), %s211_s23, 4294967040  ;;  %v241_v0 = vld [vmem:[%s214_s15] sm:$0xff]  ;;  %v242_v1 = vld [vmem:[%s214_s15 + $0x8] sm:$0xff]  ;;  %v709_v3 = vmov 0.0   ;;  %vm710_vm0 = vmmov 0   ;;  %v251_v5 = vlaneseq  ;;  %vm257_vm1 = vcmask 64512  }
  0x38   : > { %v243_v2 = vadd.f32 %v242_v1, %v241_v0  ;;  %544 = vmatprep.subr.mxu0 %v709_v3  ;;  %v248_v4 = vld [vmem:[%s920_s1] sm:$0xff]  ;;  %549 = vmatprep.subr.mxu1 %v709_v3  ;;  %vm343_vm2 = vcmask 1043456   ;;  %vm339_vm3 = vcmask 31744   ;;  %s539_s7 = sshll.u32 %s763_s22, 8  ;;  %s240_s9 = scalar_lea.vmem [#allocation5], %s526_s17 }
  0x39   : > { %545 = vmatpush3.msra.mxu0 %v248_v4  ;;  %546 = vmatprep.mubr.msk.f32.mxu0 %vm710_vm0, %v709_v3  ;;  %v252_v6 = vand.u32 127, %v251_v5  ;;  %v254_v7 = vshrl.u32 %v251_v5, 7  ;;  %v337_v12 = vld [vmem:[%s922_s3] sm:$0xf]  ;;  %s449_s10 = sshll.u32 %s240_s9, 4  ;;  %s875_s15 = scalar_lea.hbm %s924_s5, %s539_s7  ;;  %s877_s10 = int_to_ptr.vmem [resolvable:$true] %s449_s10 }
  0x3a   : > { %244 = vadd.xlane.f32.xlu0 %v243_v2  ;;  %551 = vmatprep.mubr.msk.f32.mxu1 %vm710_vm0, %v709_v3  ;;  %v249_v13 = vld [vmem:[%s921_s2] sm:$0x1]  ;;  %s435_s12 = scalar_lea.sflag [#allocation4], %s847_s13  ;;  %s640_s22 = scalar_lea.vmem %s877_s10, 256 }
  0x3b   : > { %v255_v8 = vsub.s32 %v252_v6, %v254_v7  ;;  %550 = vmatpush3.msk.msra.mxu1 %vm343_vm2, %v337_v12  ;;  %v338_v22 = vld [vmem:[%s923_s4] sm:$0x1]  ;;  %v425_v29 = vsub.s32 0, %v254_v7  ;;  %p641_p6 = scmp.ne.s32.totalorder %s877_s10, %s640_s22  ;;  %p933_p11 = scmp.ne.s32.totalorder %s928_s30, 0 }
  0x3c   : > { %s711_s17 = smov [#allocation5]  }
  0x3d   : > { %p642_p12 = pnand %p641_p6, %p933_p11  ;;  %s644_s14 = sshll.u32 %s711_s17, 4  ;;  %s645_s14 = int_to_ptr.vmem [resolvable:$false] %s644_s14 }
  0x3e   : > { %s646_s29 = scalar_lea.vmem %s645_s14, 512  ;;  %p647_p7 = scmp.lt.s32.totalorder %s877_s10, %s645_s14 }
  0x3f   : > { %p643_p13 = pneg %p642_p12  ;;  %p648_p10 = scmp.lt.s32.totalorder %s646_s29, %s640_s22 }
  0x41   : > { %p649_p2 = por %p648_p10, %p647_p7 }
  0x43   : > { %p650_p4 = pnand %p649_p2, %p643_p13 }
  0xc7   : > { %v245_v9 = vpop.xlane.xlu0 %244 }
  0xc8   : > { %v247_v10 = vmul.f32 0.00390625, %v245_v9 }
  0xca   : > { %v256_v11 = vrot.slane %v247_v10, %v255_v8 }
  0xcc   : > { %547 = vmatmul.mubr.msk.f32.vlgmr.msra.gmra.mrb[0].mxu0 %vm257_vm1, %v256_v11 }
 0x19f   : > { %v326_v14 = vpop.f32.mrb[0].mxu0 }
 0x1a0   : > { %v327_v15 = vadd.f32 %v326_v14, %v249_v13  ;;  %v548_v16 = vpop.f32.mrb[1].mxu0 }
 0x1a2   : > { %v529_v17 = vmul.f32 -1.442695, %v327_v15 }
 0x1a4   : > { %602 = vpow2.f32 %v529_v17 }
 0x1ae   : > { %v603_v18 = vpop.eup %602 }
 0x1af   : > { %v333_v19 = vadd.f32 1.0, %v603_v18 }
 0x1b1   : > { %604 = vrcp.f32 %v333_v19 }
 0x1bb   : > { %v605_v20 = vpop.eup %604 }
 0x1bc   : > { %v336_v21 = vmul.f32 %v605_v20, %v327_v15 }
 0x1be   : > { %552 = vmatmul.mubr.msk.f32.vlgmr.msra.gmra.mrb[0].mxu1 %vm339_vm3, %v336_v21 }
 0x291   : > { %v413_v23 = vpop.f32.mrb[0].mxu1 }
 0x292   : > { %v414_v24 = vadd.f32 %v413_v23, %v338_v22  ;;  %v553_v25 = vpop.f32.mrb[1].mxu1 }
 0x294   : > { %v532_v26 = vmul.f32 -1.442695, %v414_v24 }
 0x296   : > { %606 = vpow2.f32 %v532_v26 }
 0x2a0   : > { %v607_v27 = vpop.eup %606 }
 0x2a1   : > { %v420_v28 = vadd.f32 1.0, %v607_v27 }
 0x2a3   : > { %608 = vrcp.f32 %v420_v28 }
 0x2ad   : > { %v609_v30 = vpop.eup %608 }
 0x2ae   : > { %v426_v31 = vrot.slane %v609_v30, %v425_v29 }
 0x2b0   : > { %428 = vbcast.lane.b32.xlu0 %v426_v31, 256 }
 0x322   : > { %v429_v32 = vpop.permute.xlu0 %428 }
 0x323   : > { %v430_v33 = vmul.f32 %v429_v32, %v241_v0  ;;  %v431_v34 = vmul.f32 %v429_v32, %v242_v1 }
 0x325   : > { %432 = vst [vmem:[%s240_s9] sm:$0xff] %v430_v33  ;;  %433 = vst [vmem:[%s240_s9 + $0x8] sm:$0xff] %v431_v34 }
 0x326   : > { %653 = shalt.err (!%p650_p4)
}
 0x327   : > { %s654_s13 = scalar_lea.hbm %s875_s15, 256  ;;  %s658_s26 = scalar_lea.hbm %s924_s5, 512 }
 0x328   : > { %p655_p5 = scmp.ne.s32.totalorder %s875_s15, %s654_s13  ;;  %p659_p0 = scmp.lt.u32.totalorder %s875_s15, %s924_s5 }
 0x329   : > { %p660_p1 = scmp.lt.u32.totalorder %s658_s26, %s654_s13  ;;  %p662_p6 = scmp.lt.u32.totalorder %s654_s13, %s875_s15 }
 0x32a   : > { %p656_p8 = pnand %p655_p5, %p933_p11 }
 0x32b   : > { %p661_p3 = por %p660_p1, %p659_p0 }
 0x32c   : > { %p657_p9 = pneg %p656_p8 }
 0x32d   : > { %p663_p12 = por %p662_p6, %p661_p3 }
 0x32f   : > { %p664_p13 = pnand %p663_p12, %p657_p9 }
 0x331   : > { %667 = shalt.err (!%p664_p13)
}
 0x332   : > { %556 = dma.vmem_to_hbm [thread:$0]  (%p933_p11), %s877_s10, 256, %s875_s15, %s435_s12  }
 0x333 PF: > { %s461_s7 = sand.u32 1, %s694_s18   ;;  %p934_p7 = scmp.ne.s32.totalorder %s929_s6, 0 }
 0x334   : > { %p935_p10 = scmp.ge.s32.totalorder %s706_s21, 2  ;;  %s462_s9 = scalar_lea.sflag [#allocation4], %s461_s7 }
 0x336   : > { %p563_p2 = pnand %p935_p10, %p934_p7 }
 0x338   : > { %689 = dma.done.wait (!%p563_p2), %s462_s9, 256  }
 0x339   : > { %691 = vsyncadd (!%p563_p2), %s462_s9, 4294967040  ;;  %p18_p4 = scmp.ge.s32.totalorder %s767_s24, 4   ;;  %s936_s18 = smov %s698_s19 }
 0x33a   : > { %s937_s19 = smov %s702_s20  ;;  %s938_s20 = smov %s779_s27 }
 0x33b   : > { %s939_s21 = smov %s767_s24  ;;  %20 = sbr.rel (!%p18_p4) target bundleno = 5 (0x5), region = 85 }
 0x342   :  { %467 = vsyncpa [#allocation3], 1 }
 0x343   :  { %469 = vsyncpa [#allocation3 + $0x1], 1 }
 0x344   :  { %470 = vsyncpa [#allocation4], 1 }
 0x345   :  { %472 = vsyncpa [#allocation4 + $0x1], 1 }

</bundles_post_ra>
